<compile_context>
chip_gen: v7x
topology: tpu7x:2x2x1
jax: 0.10.0
libtpu: 0.0.40
codegen_flags: <defaults>
</compile_context>

<pallas_src>
import functools

import jax
import jax.numpy as jnp
from jax.experimental import pallas as pl
from jax.experimental.pallas import tpu as pltpu


def _round_up(x, m):
    return ((x + m - 1) // m) * m


def _mlp_kernel(x_ref, w1_ref, b1_ref, w2_ref, b2_ref, o_ref, *, approx_sigmoid):
    # fc1: (TM, IN) @ (IN, HID) -> f32 accumulator, bias added in f32.
    h = jnp.dot(x_ref[...], w1_ref[...], preferred_element_type=jnp.float32)
    h = h + b1_ref[...]

    # SIGMOID on the f32 accumulator. exp goes to the EUP; with approx_sigmoid
    # the reciprocal also goes to the EUP slot (essentially free while the MXU
    # streams), otherwise we keep the exact divide for tight validation.
    denom = 1.0 + jnp.exp(-h)
    if approx_sigmoid:
        h = pl.reciprocal(denom, approx=True)
    else:
        h = 1.0 / denom

    # fc2: (TM, HID) @ (HID, OUTp) -> f32 accumulator, bias added in f32.
    out = jnp.dot(h.astype(w2_ref.dtype), w2_ref[...],
                  preferred_element_type=jnp.float32)
    out = out + b2_ref[...]
    o_ref[...] = out.astype(o_ref.dtype)


def mlp_pallas(x, w1, b1, w2, b2, *, tm=256, compute_dtype=None,
               approx_sigmoid=False):
    """x: (B, N, IN); w1: (IN, HID); b1: (HID,); w2: (HID, OUT); b2: (OUT,).

    compute_dtype: optional dtype (e.g. jnp.bfloat16) for the matmul inputs;
                   accumulation, bias adds and sigmoid stay in f32.
    """
    B, N, IN = x.shape
    HID = w1.shape[1]
    OUT = w2.shape[1]
    M = B * N
    out_dtype = x.dtype

    x2d = x.reshape(M, IN)
    if compute_dtype is not None:
        x2d = x2d.astype(compute_dtype)
        w1 = w1.astype(compute_dtype)
        w2 = w2.astype(compute_dtype)

    # Biases live in f32 and are added to the f32 accumulator inside the kernel.
    b1_2d = b1.reshape(1, HID).astype(jnp.float32)
    b2_2d = b2.reshape(1, OUT).astype(jnp.float32)

    # Lane-dense output: pad OUT up to a multiple of 128 so stores are
    # unmasked full-width vst (zero-padded weight/bias columns, sliced off
    # after the call). Real ViT shapes (OUT=768) are already dense.
    OUTp = _round_up(OUT, 128)
    if OUTp != OUT:
        w2 = jnp.pad(w2, ((0, 0), (0, OUTp - OUT)))
        b2_2d = jnp.pad(b2_2d, ((0, 0), (0, OUTp - OUT)))

    # Token tile: as large as requested (MXU-friendly, amortizes per-step
    # overhead) but never larger than the (8-rounded) token count, so tiny
    # test shapes don't blow up padding. Always a multiple of 8.
    tm_eff = max(8, min(_round_up(tm, 8), _round_up(M, 8)))
    grid_m = pl.cdiv(M, tm_eff)
    Mp = grid_m * tm_eff
    if Mp != M:
        x2d = jnp.pad(x2d, ((0, Mp - M), (0, 0)))

    # Explicit VMEM budget: weights kept resident (+ conservative 2x for
    # pipelining buffers) plus double-buffered x/out tiles and biases.
    x_bytes = jnp.dtype(x2d.dtype).itemsize
    w_bytes = jnp.dtype(w1.dtype).itemsize
    o_bytes = jnp.dtype(out_dtype).itemsize
    vmem_needed = (
        2 * tm_eff * IN * x_bytes
        + 2 * tm_eff * OUTp * o_bytes
        + 2 * (IN * HID + HID * OUTp) * w_bytes
        + 2 * (HID + OUTp) * 4
    )
    # Clamp to [32 MiB default, 64 MiB] so it is valid on v5e/v6e/v7x alike.
    vmem_limit = int(min(64 * 1024 * 1024,
                         max(32 * 1024 * 1024, vmem_needed * 3 // 2)))

    kernel = functools.partial(_mlp_kernel, approx_sigmoid=approx_sigmoid)

    out2d = pl.pallas_call(
        kernel,
        out_shape=jax.ShapeDtypeStruct((Mp, OUTp), out_dtype),
        grid_spec=pltpu.PrefetchScalarGridSpec(
            num_scalar_prefetch=0,
            grid=(grid_m,),
            in_specs=[
                pl.BlockSpec((tm_eff, IN), lambda i: (i, 0)),   # x tile
                pl.BlockSpec((IN, HID), lambda i: (0, 0)),      # w1 (resident)
                pl.BlockSpec((1, HID), lambda i: (0, 0)),       # b1
                pl.BlockSpec((HID, OUTp), lambda i: (0, 0)),    # w2 (resident)
                pl.BlockSpec((1, OUTp), lambda i: (0, 0)),      # b2
            ],
            out_specs=pl.BlockSpec((tm_eff, OUTp), lambda i: (i, 0)),
        ),
        compiler_params=pltpu.CompilerParams(
            dimension_semantics=("parallel",),
            vmem_limit_bytes=vmem_limit,
        ),
    )(x2d, w1, b1_2d, w2, b2_2d)

    return out2d[:M, :OUT].reshape(B, N, OUT)


def mlp_reference(x, w1, b1, w2, b2):
    h = jnp.einsum("bni,ih->bnh", x, w1) + b1
    h = jax.nn.sigmoid(h)
    return jnp.einsum("bnh,ho->bno", h, w2) + b2


if __name__ == "__main__":
    # Small shapes consistent with the module: batch=2, seq=8,
    # in_features=32, hidden_features=64, out_features=32.
    B, N, IN, HID, OUT = 2, 8, 32, 64, 32

    key = jax.random.PRNGKey(0)
    kx, k1, kb1, k2, kb2 = jax.random.split(key, 5)

    x = jax.random.normal(kx, (B, N, IN), dtype=jnp.float32)
    # Deterministic parameter init (nn.Linear-like scales).
    w1 = jax.random.normal(k1, (IN, HID), dtype=jnp.float32) * (1.0 / IN) ** 0.5
    b1 = jax.random.normal(kb1, (HID,), dtype=jnp.float32) * 0.01
    w2 = jax.random.normal(k2, (HID, OUT), dtype=jnp.float32) * (1.0 / HID) ** 0.5
    b2 = jax.random.normal(kb2, (OUT,), dtype=jnp.float32) * 0.01

    ref = mlp_reference(x, w1, b1, w2, b2)

    # Exact (f32, exact sigmoid) path — tight tolerance.
    out = mlp_pallas(x, w1, b1, w2, b2)
    jax.block_until_ready(out)
    assert out.shape == (B, N, OUT)
    assert jnp.allclose(out, ref, atol=1e-5, rtol=1e-5), "f32 mismatch vs reference"

    # Fast path — bf16 matmul inputs (f32 accumulation) + EUP approx reciprocal.
    out_fast = mlp_pallas(x, w1, b1, w2, b2,
                          compute_dtype=jnp.bfloat16, approx_sigmoid=True)
    jax.block_until_ready(out_fast)
    assert out_fast.shape == (B, N, OUT)
    assert jnp.allclose(out_fast, ref, atol=1e-1, rtol=1e-1), \
        "bf16 mismatch vs reference"

    print("KERNEL_OK")
</pallas_src>

<mosaic_0001>
module attributes {stable_mosaic.version = 11 : i64} {
  func.func @_mlp_kernel(%arg0: i32, %arg1: memref<16x32xf32, #tpu.memory_space<vmem>>, %arg2: memref<32x64xf32, #tpu.memory_space<vmem>>, %arg3: memref<1x64xf32, #tpu.memory_space<vmem>>, %arg4: memref<64x128xf32, #tpu.memory_space<vmem>>, %arg5: memref<1x128xf32, #tpu.memory_space<vmem>>, %arg6: memref<16x128xf32, #tpu.memory_space<vmem>>) attributes {dimension_semantics = [#tpu.dimension_semantics<parallel>], iteration_bounds = array<i64: 1>, scalar_prefetch = 0 : i64, scratch_operands = 0 : i64, tpu.core_type = #tpu.core_type<tc>, window_params = [{transform_indices = @transform_0, window_bounds = array<i64: 16, 32>}, {pipeline_mode = #tpu.pipeline_mode<synchronous>, transform_indices = @transform_1, window_bounds = array<i64: 32, 64>}, {pipeline_mode = #tpu.pipeline_mode<synchronous>, transform_indices = @transform_2, window_bounds = array<i64: 1, 64>}, {pipeline_mode = #tpu.pipeline_mode<synchronous>, transform_indices = @transform_3, window_bounds = array<i64: 64, 128>}, {pipeline_mode = #tpu.pipeline_mode<synchronous>, transform_indices = @transform_4, window_bounds = array<i64: 1, 128>}, {transform_indices = @transform_5, window_bounds = array<i64: 16, 128>}]} {
    %c0 = arith.constant 0 : index
    %c0_0 = arith.constant 0 : index
    %0 = vector.load %arg1[%c0, %c0_0] : memref<16x32xf32, #tpu.memory_space<vmem>>, vector<16x32xf32>
    %c0_1 = arith.constant 0 : index
    %c0_2 = arith.constant 0 : index
    %1 = vector.load %arg2[%c0_1, %c0_2] : memref<32x64xf32, #tpu.memory_space<vmem>>, vector<32x64xf32>
    %cst = arith.constant dense<0.000000e+00> : vector<16x64xf32>
    %2 = tpu.matmul %0, %1, %cst {dimension_numbers = #tpu.dot_dimension_numbers<[1], [0], [0], [1], [0, 0, 1, 1], [], []>} : vector<16x32xf32>, vector<32x64xf32>, vector<16x64xf32> -> vector<16x64xf32>
    %c0_3 = arith.constant 0 : index
    %c0_4 = arith.constant 0 : index
    %3 = vector.load %arg3[%c0_3, %c0_4] : memref<1x64xf32, #tpu.memory_space<vmem>>, vector<1x64xf32>
    %4 = vector.broadcast %3 : vector<1x64xf32> to vector<16x64xf32>
    %5 = arith.addf %2, %4 : vector<16x64xf32>
    %cst_5 = arith.constant 0.000000e+00 : f32
    %6 = vector.broadcast %cst_5 : f32 to vector<16x64xf32>
    %7 = arith.subf %6, %5 : vector<16x64xf32>
    %8 = math.exp %7 : vector<16x64xf32>
    %cst_6 = arith.constant 1.000000e+00 : f32
    %9 = vector.broadcast %cst_6 : f32 to vector<16x64xf32>
    %10 = arith.addf %9, %8 : vector<16x64xf32>
    %cst_7 = arith.constant 1.000000e+00 : f32
    %11 = vector.broadcast %cst_7 : f32 to vector<16x64xf32>
    %12 = arith.divf %11, %10 : vector<16x64xf32>
    %c0_8 = arith.constant 0 : index
    %c0_9 = arith.constant 0 : index
    %13 = vector.load %arg4[%c0_8, %c0_9] : memref<64x128xf32, #tpu.memory_space<vmem>>, vector<64x128xf32>
    %cst_10 = arith.constant dense<0.000000e+00> : vector<16x128xf32>
    %14 = tpu.matmul %12, %13, %cst_10 {dimension_numbers = #tpu.dot_dimension_numbers<[1], [0], [0], [1], [0, 0, 1, 1], [], []>} : vector<16x64xf32>, vector<64x128xf32>, vector<16x128xf32> -> vector<16x128xf32>
    %c0_11 = arith.constant 0 : index
    %c0_12 = arith.constant 0 : index
    %15 = vector.load %arg5[%c0_11, %c0_12] : memref<1x128xf32, #tpu.memory_space<vmem>>, vector<1x128xf32>
    %16 = vector.broadcast %15 : vector<1x128xf32> to vector<16x128xf32>
    %17 = arith.addf %14, %16 : vector<16x128xf32>
    %c0_13 = arith.constant 0 : index
    %c0_14 = arith.constant 0 : index
    %18 = vector.load %arg6[%c0_13, %c0_14] : memref<16x128xf32, #tpu.memory_space<vmem>>, vector<16x128xf32>
    tpu.vector_store %arg6[%c0_13, %c0_14], %17 {strides = array<i32>} : memref<16x128xf32, #tpu.memory_space<vmem>>, vector<16x128xf32>,
    return
  }
  func.func @transform_0(%arg0: i32) -> (i32, i32) {
    %c0_i32 = arith.constant 0 : i32
    %c0_i32_0 = arith.constant 0 : i32
    return %arg0, %c0_i32 : i32, i32
  }
  func.func @transform_1(%arg0: i32) -> (i32, i32) {
    %c0_i32 = arith.constant 0 : i32
    %c0_i32_0 = arith.constant 0 : i32
    %c0_i32_1 = arith.constant 0 : i32
    return %c0_i32, %c0_i32_0 : i32, i32
  }
  func.func @transform_2(%arg0: i32) -> (i32, i32) {
    %c0_i32 = arith.constant 0 : i32
    %c0_i32_0 = arith.constant 0 : i32
    %c0_i32_1 = arith.constant 0 : i32
    return %c0_i32, %c0_i32_0 : i32, i32
  }
  func.func @transform_3(%arg0: i32) -> (i32, i32) {
    %c0_i32 = arith.constant 0 : i32
    %c0_i32_0 = arith.constant 0 : i32
    %c0_i32_1 = arith.constant 0 : i32
    return %c0_i32, %c0_i32_0 : i32, i32
  }
  func.func @transform_4(%arg0: i32) -> (i32, i32) {
    %c0_i32 = arith.constant 0 : i32
    %c0_i32_0 = arith.constant 0 : i32
    %c0_i32_1 = arith.constant 0 : i32
    return %c0_i32, %c0_i32_0 : i32, i32
  }
  func.func @transform_5(%arg0: i32) -> (i32, i32) {
    %c0_i32 = arith.constant 0 : i32
    %c0_i32_0 = arith.constant 0 : i32
    return %arg0, %c0_i32 : i32, i32
  }
}

</mosaic_0001>

<bundles_post_ra>
// kernel: tpu_custom_call.1
= control target key start
LH: loop header
LB: loop body
LE: loop exit
PB: predicated region body
PF: predicated region fallthrough
CT: control target
= control target key end

     0   :  { %10 = vsyncpa [#allocation3], 0  ;;  %s579_s0 = inlined_call_operand.hbm [shape: f32[16,32], index: 0, kind: input, shape index: {}]   ;;  %s580_s1 = inlined_call_operand.hbm [shape: f32[32,64], index: 1, kind: input, shape index: {}]   ;;  %s581_s2 = inlined_call_operand.vmem [shape: f32[1,64], index: 2, kind: input, shape index: {}]   ;;  %s582_s3 = inlined_call_operand.hbm [shape: f32[64,128], index: 3, kind: input, shape index: {}]   ;;  %s583_s4 = inlined_call_operand.vmem [shape: f32[1,128], index: 4, kind: input, shape index: {}]   ;;  %s584_s5 = inlined_call_operand.hbm [shape: f32[16,128], index: 5, kind: output, shape index: {}]  }
   0x1   :  { %11 = vsyncpa [#allocation6], 0 }
   0x2   :  { %12 = vsyncpa [#allocation4], 0  ;;  %s470_s18 = smov [#allocation5]   ;;  %s471_s20 = smov [#allocation2]  }
   0x3   :  { %s30_s19 = sshll.u32 %s470_s18, 4  ;;  %s18_s21 = sshll.u32 %s471_s20, 4  ;;  %s31_s19 = int_to_ptr.vmem [resolvable:$true] %s30_s19  ;;  %s506_s21 = int_to_ptr.vmem [resolvable:$true] %s18_s21 }
   0x4   :  { %s376_s24 = scalar_lea.hbm %s580_s1, 512 }
   0x5   :  { %p377_p0 = scmp.ne.s32.totalorder %s580_s1, %s376_s24  ;;  %p380_p1 = scmp.lt.u32.totalorder %s376_s24, %s580_s1 }
   0x7   :  { %p382_p2 = pnand %p380_p1, %p377_p0 }
   0x9   :  { %385 = shalt.err (!%p382_p2)
}
   0xa   :  { %s386_s29 = scalar_lea.vmem %s31_s19, 512  ;;  %p391_p4 = scmp.lt.s32.totalorder %s31_s19, %s31_s19 }
   0xb   :  { %p387_p3 = scmp.ne.s32.totalorder %s31_s19, %s386_s29  ;;  %p392_p5 = scmp.lt.s32.totalorder %s386_s29, %s386_s29 }
   0xd   :  { %p393_p6 = por %p392_p5, %p391_p4 }
   0xf   :  { %p394_p7 = pnand %p393_p6, %p387_p3 }
  0x11   :  { %397 = shalt.err (!%p394_p7)
}
  0x12   :  { %s472_s30 = smov 128   ;;  %s473_s6 = smov 8  }
  0x13   :  { %36 = dma.hbm_to_vmem [thread:$0]  %s580_s1, 512, %s31_s19, [#allocation6], %s472_s30, %s472_s30, %s473_s6  }
  0x14   :  { %s398_s11 = scalar_lea.hbm %s579_s0, 256 }
  0x15   :  { %p399_p8 = scmp.ne.s32.totalorder %s579_s0, %s398_s11  ;;  %p402_p9 = scmp.lt.u32.totalorder %s398_s11, %s579_s0 }
  0x17   :  { %p404_p10 = pnand %p402_p9, %p399_p8 }
  0x19   :  { %407 = shalt.err (!%p404_p10)
}
  0x1a   :  { %s408_s16 = scalar_lea.vmem %s506_s21, 256  ;;  %p413_p12 = scmp.lt.s32.totalorder %s506_s21, %s506_s21 }
  0x1b   :  { %p409_p11 = scmp.ne.s32.totalorder %s506_s21, %s408_s16  ;;  %p414_p13 = scmp.lt.s32.totalorder %s408_s16, %s408_s16 }
  0x1d   :  { %p415_p0 = por %p414_p13, %p413_p12 }
  0x1f   :  { %p416_p1 = pnand %p415_p0, %p409_p11 }
  0x21   :  { %419 = shalt.err (!%p416_p1)
}
  0x22   :  { %24 = dma.hbm_to_vmem [thread:$0]  %s579_s0, 256, %s506_s21, [#allocation3], %s472_s30, %s472_s30, %s473_s6  }
  0x23   :  { %s474_s18 = smov [#allocation7]   ;;  %s420_s23 = scalar_lea.hbm %s582_s3, 1024 }
  0x24   :  { %s44_s19 = sshll.u32 %s474_s18, 4  ;;  %p421_p2 = scmp.ne.s32.totalorder %s582_s3, %s420_s23  ;;  %s45_s19 = int_to_ptr.vmem [resolvable:$true] %s44_s19 }
  0x25   :  { %p424_p3 = scmp.lt.u32.totalorder %s420_s23, %s582_s3 }
  0x27   :  { %p426_p4 = pnand %p424_p3, %p421_p2 }
  0x29   :  { %429 = shalt.err (!%p426_p4)
}
  0x2a   :  { %s430_s28 = scalar_lea.vmem %s45_s19, 1024  ;;  %p435_p6 = scmp.lt.s32.totalorder %s45_s19, %s45_s19 }
  0x2b   :  { %p431_p5 = scmp.ne.s32.totalorder %s45_s19, %s430_s28  ;;  %p436_p7 = scmp.lt.s32.totalorder %s430_s28, %s430_s28 }
  0x2d   :  { %p437_p8 = por %p436_p7, %p435_p6 }
  0x2f   :  { %p438_p9 = pnand %p437_p8, %p431_p5 }
  0x31   :  { %441 = shalt.err (!%p438_p9)
}
  0x32   :  { %50 = dma.hbm_to_vmem [thread:$0]  %s582_s3, 1024, %s45_s19, [#allocation6], %s472_s30, %s472_s30, %s473_s6  }
  0x33   :  { %464 = dma.done.wait [#allocation3], 256  }
  0x34   :  { %465 = vsyncadd [#allocation3], 4294967040 }
  0x35   :  { %466 = dma.done.wait [#allocation6], 1536  }
  0x36   :  { %467 = vsyncadd [#allocation6], 4294965760  ;;  %vm75_vm0 = vcmask 261120   ;;  %v64_v0 = vld [vmem:[#allocation5] sm:$0xff]  ;;  %v65_v1 = vld [vmem:[#allocation5 + $0x8] sm:$0xff]  ;;  %vm184_vm1 = vcmask 523264  }
  0x37   :  { %v66_v2 = vld [vmem:[#allocation5 + $0x10] sm:$0xff]  ;;  %v338_v3 = vpack.c.bf16 %v65_v1, %v64_v0  ;;  %v67_v4 = vld [vmem:[#allocation5 + $0x18] sm:$0xff]  ;;  %v169_v8 = vld [vmem:[#allocation7] sm:$0xff]  ;;  %s475_s8 = smov [#allocation8]  }
  0x38   :  { %v62_v5 = vld [vmem:[#allocation2] sm:$0xff]  ;;  %v342_v6 = vpack.c.bf16 %v67_v4, %v66_v2  ;;  %v63_v7 = vld [vmem:[#allocation2 + $0x8] sm:$0xff]  ;;  %v170_v9 = vld [vmem:[#allocation7 + $0x8] sm:$0xff]  ;;  %s273_s9 = sshll.u32 %s475_s8, 4  ;;  %s274_s9 = int_to_ptr.vmem [resolvable:$true] %s273_s9 }
  0x39   :  { %316 = vmatprep.mubr.msk.f32.mxu0 %vm75_vm0, %v62_v5  ;;  %339 = vmatprep.subr.bf16.mxu0 %v338_v3  ;;  %v346_v10 = vpack.c.bf16 %v170_v9, %v169_v8  ;;  %v171_v11 = vld [vmem:[#allocation7 + $0x10] sm:$0xff]  ;;  %v172_v12 = vld [vmem:[#allocation7 + $0x18] sm:$0xff]  ;;  %v173_v14 = vld [vmem:[#allocation7 + $0x20] sm:$0xff]  ;;  %s442_s10 = scalar_lea.vmem %s274_s9, 256  ;;  %p447_p11 = scmp.lt.s32.totalorder %s274_s9, %s274_s9 }
  0x3a   :  { %341 = vmatpush3.bf16.msra.mxu0 %v338_v3  ;;  %v350_v13 = vpack.c.bf16 %v172_v12, %v171_v11  ;;  %v174_v15 = vld [vmem:[#allocation7 + $0x28] sm:$0xff]  ;;  %v175_v16 = vld [vmem:[#allocation7 + $0x30] sm:$0xff]  ;;  %v176_v18 = vld [vmem:[#allocation7 + $0x38] sm:$0xff]  ;;  %p443_p10 = scmp.ne.s32.totalorder %s274_s9, %s442_s10  ;;  %p448_p12 = scmp.lt.s32.totalorder %s442_s10, %s442_s10 }
  0x3b   :  { %343 = vmatprep.subr.bf16.mxu0 %v342_v6  ;;  %347 = vmatprep.subr.bf16.mxu1 %v346_v10  ;;  %v354_v17 = vpack.c.bf16 %v174_v15, %v173_v14  ;;  %v358_v19 = vpack.c.bf16 %v176_v18, %v175_v16  ;;  %v286_v20 = vld [vmem:[%s581_s2] ss:$0 sm:$0xff] }
  0x3c   :  { %349 = vmatpush3.bf16.msra.mxu1 %v346_v10  ;;  %v289_v35 = vld [vmem:[%s583_s4] ss:$0 sm:$0xff]  ;;  %p449_p13 = por %p448_p12, %p447_p11 }
  0x3d   :  { %351 = vmatprep.subr.bf16.mxu1 %v350_v13 }
  0x3e   :  { %345 = vmatpush3.bf16.msra.mxu0 %v342_v6  ;;  %p450_p0 = pnand %p449_p13, %p443_p10 }
  0x40   :  { %353 = vmatpush3.bf16.msra.mxu1 %v350_v13 }
  0x41   :  { %317 = vmatmul.mubr.msk.f32.vlgmr.msra.gmra.mrb[0].mxu0 %vm75_vm0, %v63_v7  ;;  %355 = vmatprep.subr.bf16.mxu1 %v354_v17 }
  0x44   :  { %357 = vmatpush3.bf16.msra.mxu1 %v354_v17 }
  0x45   :  { %359 = vmatprep.subr.bf16.mxu1 %v358_v19 }
  0x48   :  { %361 = vmatpush3.bf16.msra.mxu1 %v358_v19 }
 0x114   :  { %v318_v21 = vpop.f32.mrb[0].mxu0 }
 0x115   :  { %v154_v22 = vadd.f32 %v318_v21, %v286_v20  ;;  %v148_v23 = vpop.f32.mrb[1].mxu0 }
 0x116   :  { %v149_v24 = vadd.f32 %v286_v20, %v148_v23 }
 0x117   :  { %v158_v25 = vsub.f32 0.0, %v154_v22 }
 0x118   :  { %v157_v26 = vsub.f32 0.0, %v149_v24 }
 0x119   :  { %v161_v27 = vmul.f32 1.442695, %v158_v25 }
 0x11a   :  { %v159_v28 = vmul.f32 1.442695, %v157_v26 }
 0x11b   :  { %368 = vpow2.f32 %v161_v27 }
 0x11c   :  { %370 = vpow2.f32 %v159_v28 }
 0x125   :  { %v369_v29 = vpop.eup %368 }
 0x126   :  { %v371_v30 = vpop.eup %370  ;;  %v164_v31 = vadd.f32 1.0, %v369_v29 }
 0x127   :  { %v163_v32 = vadd.f32 1.0, %v371_v30 }
 0x129   :  { %372 = vrcp.f32 %v163_v32 }
 0x12a   :  { %374 = vrcp.f32 %v164_v31 }
 0x133   :  { %v373_v33 = vpop.eup %372 }
 0x134   :  { %v375_v34 = vpop.eup %374  ;;  %335 = vmatprep.mubr.msk.f32.mxu1 %vm184_vm1, %v373_v33 }
 0x135   :  { %336 = vmatmul.mubr.msk.f32.vlgmr.msra.gmra.mrb[0].mxu1 %vm184_vm1, %v375_v34 }
 0x208   :  { %v337_v36 = vpop.f32.mrb[0].mxu1 }
 0x209   :  { %v263_v37 = vadd.f32 %v337_v36, %v289_v35  ;;  %v257_v38 = vpop.f32.mrb[1].mxu1 }
 0x20a   :  { %v258_v39 = vadd.f32 %v289_v35, %v257_v38 }
 0x20b   :  { %267 = vst [vmem:[#allocation8 + $0x8] sm:$0xff] %v263_v37 }
 0x20c   :  { %266 = vst [vmem:[#allocation8] sm:$0xff] %v258_v39 }
 0x20d   :  { %453 = shalt.err (!%p450_p0)
}
 0x20e   :  { %s454_s4 = scalar_lea.hbm %s584_s5, 256 }
 0x20f   :  { %p455_p1 = scmp.ne.s32.totalorder %s584_s5, %s454_s4  ;;  %p458_p2 = scmp.lt.u32.totalorder %s454_s4, %s584_s5 }
 0x211   :  { %p460_p3 = pnand %p458_p2, %p455_p1 }
 0x213   :  { %463 = shalt.err (!%p460_p3)
}
 0x214   :  { %279 = dma.vmem_to_hbm [thread:$0]  %s274_s9, 256, %s584_s5, [#allocation4], %s472_s30, %s472_s30, %s473_s6  }
 0x215   :  { %468 = dma.done.wait [#allocation4], 256  }
 0x216   :  { %469 = vsyncadd [#allocation4], 4294967040 }
 0x217   :  { %283 = vsyncpa [#allocation3], 1 }
 0x218   :  { %284 = vsyncpa [#allocation6], 1 }
 0x219   :  { %285 = vsyncpa [#allocation4], 1 }

</bundles_post_ra>
